<compile_context>
chip_gen: v7x
topology: tpu7x:2x2x1
jax: 0.10.0
libtpu: 0.0.40
codegen_flags: <defaults>
</compile_context>

<pallas_src>
import functools

import jax
import jax.numpy as jnp
from jax.experimental import pallas as pl
from jax.experimental.pallas import tpu as pltpu


def _round_up(x, m):
    return (x + m - 1) // m * m


def ffn_layer_kernel(x_ref, w1_ref, b1_ref, w2_ref, b2_ref, g_ref, beta_ref, o_ref):
    """One (TM, d_model) row tile of: LayerNorm(x + W2 @ relu(W1 @ x + b1) + b2)."""
    x = x_ref[...]                                            # (TM, d_model), input dtype

    # Linear1: bf16 operands on the MXU, f32 accumulation.
    h = jnp.dot(x.astype(w1_ref.dtype), w1_ref[...],
                preferred_element_type=jnp.float32)
    # Bias + ReLU with the downcast fused into the epilogue, so the big
    # (TM, dff) temp that is kept around for the second matmul is bf16 only.
    h = jnp.maximum(h + b1_ref[...], 0.0).astype(w2_ref.dtype)

    # Linear2, then residual in f32.
    y = jnp.dot(h, w2_ref[...], preferred_element_type=jnp.float32)
    z = x.astype(jnp.float32) + y + b2_ref[...]

    # LayerNorm over the last dim (eps=1e-5, affine). Single-pass stats in f32:
    # var = E[z^2] - E[z]^2 (one reduction pair, no serial mean->center->var
    # dependency); rsqrt goes to the EUP.
    inv_d = 1.0 / z.shape[-1]
    mean = jnp.sum(z, axis=-1, keepdims=True) * inv_d
    mean_sq = jnp.sum(z * z, axis=-1, keepdims=True) * inv_d
    var = mean_sq - mean * mean
    normed = (z - mean) * jax.lax.rsqrt(var + 1e-5)
    o_ref[...] = (normed * g_ref[...] + beta_ref[...]).astype(o_ref.dtype)


def prepare_ffn_params(w1, b1, w2, b2, gamma, beta, compute_dtype=jnp.bfloat16):
    """One-time parameter prep (outside the per-call path): pre-transpose the
    weight matrices into row-major matmul layout and cast them to the MXU dtype;
    keep biases / LayerNorm affine params in f32."""
    dff, d_model = w1.shape
    return dict(
        w1t=jnp.asarray(w1).T.astype(compute_dtype),           # (d_model, dff)
        b1=jnp.asarray(b1, jnp.float32).reshape(1, dff),
        w2t=jnp.asarray(w2).T.astype(compute_dtype),           # (dff, d_model)
        b2=jnp.asarray(b2, jnp.float32).reshape(1, d_model),
        gamma=jnp.asarray(gamma, jnp.float32).reshape(1, d_model),
        beta=jnp.asarray(beta, jnp.float32).reshape(1, d_model),
    )


def _choose_tm(M, block_m):
    """Pick a row tile (multiple of 8, <= block_m).

    Preference order:
      1. No padding: a tile that exactly divides the 8-rounded row count,
         with >= 2 grid steps so both v7x TensorCores get work.
      2. No padding, single step (tiny inputs).
      3. Pad up to a multiple of block_m (one partial final tile).
    Returns (tm, padded_row_count).
    """
    block_m = max(8, block_m - block_m % 8)
    m8 = _round_up(M, 8)
    if m8 <= block_m:
        # Whole problem fits one tile; split in two for megacore when possible.
        if m8 >= 16 and (m8 // 2) % 8 == 0:
            return m8 // 2, m8
        return m8, m8
    # Largest multiple-of-8 divisor of m8 that is <= block_m (guarantees >= 2 tiles).
    tm = block_m
    while tm >= 8 and m8 % tm != 0:
        tm -= 8
    if tm >= max(8, block_m // 2):
        return tm, m8
    # Divisor-only tiles would be tiny; accept one padded partial tile instead.
    return block_m, _round_up(m8, block_m)


@functools.partial(jax.jit, static_argnames=("block_m",))
def ffn_layer(tgt, params, *, block_m=512):
    """tgt: (seq, batch, d_model). params from prepare_ffn_params().

    block_m: row-tile upper bound. Suggested: 512 on v5e/v6e, 256-512 on v7x
    (64 MiB VMEM/TC)."""
    seq, batch, d_model = tgt.shape
    dff = params["w1t"].shape[1]
    M = seq * batch
    x2d = tgt.reshape(M, d_model)

    tm, m_pad = _choose_tm(M, block_m)
    if m_pad != M:
        # Zero-padded rows are finite through LayerNorm and sliced off below.
        x2d = jnp.pad(x2d, ((0, m_pad - M), (0, 0)))

    grid = (m_pad // tm,)
    row_spec = pl.BlockSpec((tm, d_model), lambda i: (i, 0))
    # Constant index_map -> fetched once; Buffered(1) avoids allocating a
    # second (useless) buffer for each resident parameter.
    resident = lambda shape: pl.BlockSpec(shape, lambda i: (0, 0),
                                          pipeline_mode=pl.Buffered(1))

    itemsize = x2d.dtype.itemsize
    w_bytes = (params["w1t"].size * params["w1t"].dtype.itemsize
               + params["w2t"].size * params["w2t"].dtype.itemsize)
    small_bytes = 4 * (dff + 3 * d_model)
    # VMEM budget: single-buffered weights + double-buffered row tiles (in+out)
    # + bf16 hidden temp + f32 matmul/LayerNorm temps, with ~25% headroom.
    act_bytes = 2 * tm * d_model * (itemsize + itemsize)
    hidden_bytes = tm * dff * (4 + 2)            # f32 accumulator + bf16 copy
    ln_bytes = 2 * tm * d_model * 4
    vmem_needed = w_bytes + small_bytes + act_bytes + hidden_bytes + ln_bytes
    vmem_limit = int(min(max(vmem_needed * 1.25 + (4 << 20), 32 << 20), 100 << 20))

    cost = pl.CostEstimate(
        flops=4 * m_pad * d_model * dff + 10 * m_pad * d_model,
        transcendentals=m_pad,                       # one rsqrt per row
        bytes_accessed=2 * m_pad * d_model * itemsize + w_bytes + small_bytes,
    )

    out2d = pl.pallas_call(
        ffn_layer_kernel,
        out_shape=jax.ShapeDtypeStruct((m_pad, d_model), tgt.dtype),
        grid=grid,
        in_specs=[
            row_spec,                       # x tile (double-buffered / pipelined)
            resident((d_model, dff)),       # W1^T  (VMEM-resident, 1 buffer)
            resident((1, dff)),             # b1
            resident((dff, d_model)),       # W2^T
            resident((1, d_model)),         # b2
            resident((1, d_model)),         # gamma
            resident((1, d_model)),         # beta
        ],
        out_specs=row_spec,
        compiler_params=pltpu.CompilerParams(
            dimension_semantics=("parallel",),   # rows independent -> megacore on v7x
            vmem_limit_bytes=vmem_limit,
        ),
        cost_estimate=cost,
    )(x2d, params["w1t"], params["b1"], params["w2t"], params["b2"],
      params["gamma"], params["beta"])

    if m_pad != M:
        out2d = out2d[:M]
    return out2d.reshape(seq, batch, d_model)


def xavier_uniform(key, fan_out, fan_in, dtype=jnp.float32):
    bound = (6.0 / (fan_in + fan_out)) ** 0.5
    return jax.random.uniform(key, (fan_out, fan_in), dtype, -bound, bound)


if __name__ == "__main__":
    d_model = 32
    dim_feedforward = 64
    seq, batch = 8, 2

    key = jax.random.PRNGKey(0)
    k_x, k_w1, k_w2, k_b1, k_b2 = jax.random.split(key, 5)

    # Parameters (Linear weights xavier_uniform as in _reset_parameters).
    w1 = xavier_uniform(k_w1, dim_feedforward, d_model)    # (dff, d_model)
    b1 = 0.01 * jax.random.normal(k_b1, (dim_feedforward,), jnp.float32)
    w2 = xavier_uniform(k_w2, d_model, dim_feedforward)    # (d_model, dff)
    b2 = 0.01 * jax.random.normal(k_b2, (d_model,), jnp.float32)
    gamma = jnp.ones((d_model,), jnp.float32)              # LayerNorm weight
    beta = jnp.zeros((d_model,), jnp.float32)              # LayerNorm bias

    tgt = jax.random.normal(k_x, (seq, batch, d_model), jnp.float32)

    # One-time parameter layout/dtype prep (outside the per-call path).
    params = prepare_ffn_params(w1, b1, w2, b2, gamma, beta,
                                compute_dtype=jnp.bfloat16)

    # block_m=8 exercises the multi-tile pipelined grid even at these toy shapes
    # (M = seq*batch = 16 -> 2 row tiles, no padding copy).
    out = ffn_layer(tgt, params, block_m=8)
    jax.block_until_ready(out)

    # Matched-precision reference (same bf16 matmul operands, f32 accumulation,
    # f32 residual + LayerNorm).
    x2d = tgt.reshape(-1, d_model)
    h = jnp.dot(x2d.astype(jnp.bfloat16), params["w1t"],
                preferred_element_type=jnp.float32)
    h = jnp.maximum(h + b1, 0.0).astype(jnp.bfloat16)
    z = x2d + jnp.dot(h, params["w2t"], preferred_element_type=jnp.float32) + b2
    mean = z.mean(-1, keepdims=True)
    var = ((z - mean) ** 2).mean(-1, keepdims=True)
    ref = (((z - mean) * jax.lax.rsqrt(var + 1e-5)) * gamma + beta)
    ref = ref.reshape(seq, batch, d_model)
    assert jnp.allclose(out, ref, atol=2e-3, rtol=2e-3), \
        "mismatch vs matched-precision reference"

    # Loose sanity check against the all-f32 PyTorch-equivalent math
    # (difference is only the bf16 rounding of the matmul operands).
    hf = jnp.maximum(x2d @ w1.T + b1, 0.0)
    zf = x2d + (hf @ w2.T + b2)
    mf = zf.mean(-1, keepdims=True)
    vf = ((zf - mf) ** 2).mean(-1, keepdims=True)
    ref_f32 = (((zf - mf) / jnp.sqrt(vf + 1e-5)) * gamma + beta).reshape(seq, batch, d_model)
    assert jnp.allclose(out, ref_f32, atol=5e-2, rtol=5e-2), "mismatch vs f32 reference"

    print("KERNEL_OK")
</pallas_src>

<mosaic_0001>
module attributes {stable_mosaic.version = 11 : i64} {
  func.func @ffn_layer_kernel(%arg0: i32, %arg1: memref<8x32xf32, #tpu.memory_space<vmem>>, %arg2: memref<32x64xbf16, #tpu.memory_space<vmem>>, %arg3: memref<1x64xf32, #tpu.memory_space<vmem>>, %arg4: memref<64x32xbf16, #tpu.memory_space<vmem>>, %arg5: memref<1x32xf32, #tpu.memory_space<vmem>>, %arg6: memref<1x32xf32, #tpu.memory_space<vmem>>, %arg7: memref<1x32xf32, #tpu.memory_space<vmem>>, %arg8: memref<8x32xf32, #tpu.memory_space<vmem>>) attributes {dimension_semantics = [#tpu.dimension_semantics<parallel>], iteration_bounds = array<i64: 2>, scalar_prefetch = 0 : i64, scratch_operands = 0 : i64, tpu.core_type = #tpu.core_type<tc>, window_params = [{transform_indices = @transform_0, window_bounds = array<i64: 8, 32>}, {pipeline_mode = #tpu.pipeline_mode<synchronous>, transform_indices = @transform_1, window_bounds = array<i64: 32, 64>}, {pipeline_mode = #tpu.pipeline_mode<synchronous>, transform_indices = @transform_2, window_bounds = array<i64: 1, 64>}, {pipeline_mode = #tpu.pipeline_mode<synchronous>, transform_indices = @transform_3, window_bounds = array<i64: 64, 32>}, {pipeline_mode = #tpu.pipeline_mode<synchronous>, transform_indices = @transform_4, window_bounds = array<i64: 1, 32>}, {pipeline_mode = #tpu.pipeline_mode<synchronous>, transform_indices = @transform_5, window_bounds = array<i64: 1, 32>}, {pipeline_mode = #tpu.pipeline_mode<synchronous>, transform_indices = @transform_6, window_bounds = array<i64: 1, 32>}, {transform_indices = @transform_7, window_bounds = array<i64: 8, 32>}]} {
    %c0 = arith.constant 0 : index
    %c0_0 = arith.constant 0 : index
    %0 = vector.load %arg1[%c0, %c0_0] : memref<8x32xf32, #tpu.memory_space<vmem>>, vector<8x32xf32>
    %1 = arith.truncf %0 : vector<8x32xf32> to vector<8x32xbf16>
    %c0_1 = arith.constant 0 : index
    %c0_2 = arith.constant 0 : index
    %2 = vector.load %arg2[%c0_1, %c0_2] : memref<32x64xbf16, #tpu.memory_space<vmem>>, vector<32x64xbf16>
    %cst = arith.constant dense<0.000000e+00> : vector<8x64xf32>
    %3 = tpu.matmul %1, %2, %cst {dimension_numbers = #tpu.dot_dimension_numbers<[1], [0], [0], [1], [0, 0, 1, 1], [], []>} : vector<8x32xbf16>, vector<32x64xbf16>, vector<8x64xf32> -> vector<8x64xf32>
    %c0_3 = arith.constant 0 : index
    %c0_4 = arith.constant 0 : index
    %4 = vector.load %arg3[%c0_3, %c0_4] : memref<1x64xf32, #tpu.memory_space<vmem>>, vector<1x64xf32>
    %5 = vector.broadcast %4 : vector<1x64xf32> to vector<8x64xf32>
    %6 = arith.addf %3, %5 : vector<8x64xf32>
    %cst_5 = arith.constant 0.000000e+00 : f32
    %7 = vector.broadcast %cst_5 : f32 to vector<8x64xf32>
    %8 = arith.maximumf %6, %7 : vector<8x64xf32>
    %9 = arith.truncf %8 : vector<8x64xf32> to vector<8x64xbf16>
    %c0_6 = arith.constant 0 : index
    %c0_7 = arith.constant 0 : index
    %10 = vector.load %arg4[%c0_6, %c0_7] : memref<64x32xbf16, #tpu.memory_space<vmem>>, vector<64x32xbf16>
    %cst_8 = arith.constant dense<0.000000e+00> : vector<8x32xf32>
    %11 = tpu.matmul %9, %10, %cst_8 {dimension_numbers = #tpu.dot_dimension_numbers<[1], [0], [0], [1], [0, 0, 1, 1], [], []>} : vector<8x64xbf16>, vector<64x32xbf16>, vector<8x32xf32> -> vector<8x32xf32>
    %12 = arith.addf %0, %11 : vector<8x32xf32>
    %c0_9 = arith.constant 0 : index
    %c0_10 = arith.constant 0 : index
    %13 = vector.load %arg5[%c0_9, %c0_10] : memref<1x32xf32, #tpu.memory_space<vmem>>, vector<1x32xf32>
    %14 = vector.broadcast %13 : vector<1x32xf32> to vector<8x32xf32>
    %15 = arith.addf %12, %14 : vector<8x32xf32>
    %cst_11 = arith.constant dense<0.000000e+00> : vector<8xf32>
    %16 = vector.multi_reduction <add>, %15, %cst_11 [1] : vector<8x32xf32> to vector<8xf32>
    %17 = vector.shape_cast %16 : vector<8xf32> to vector<8x1xf32>
    %cst_12 = arith.constant 3.125000e-02 : f32
    %18 = vector.broadcast %cst_12 : f32 to vector<8x1xf32>
    %19 = arith.mulf %17, %18 : vector<8x1xf32>
    %20 = arith.mulf %15, %15 : vector<8x32xf32>
    %cst_13 = arith.constant dense<0.000000e+00> : vector<8xf32>
    %21 = vector.multi_reduction <add>, %20, %cst_13 [1] : vector<8x32xf32> to vector<8xf32>
    %22 = vector.shape_cast %21 : vector<8xf32> to vector<8x1xf32>
    %cst_14 = arith.constant 3.125000e-02 : f32
    %23 = vector.broadcast %cst_14 : f32 to vector<8x1xf32>
    %24 = arith.mulf %22, %23 : vector<8x1xf32>
    %25 = arith.mulf %19, %19 : vector<8x1xf32>
    %26 = arith.subf %24, %25 : vector<8x1xf32>
    %27 = vector.broadcast %19 : vector<8x1xf32> to vector<8x32xf32>
    %28 = arith.subf %15, %27 : vector<8x32xf32>
    %cst_15 = arith.constant 9.99999974E-6 : f32
    %29 = vector.broadcast %cst_15 : f32 to vector<8x1xf32>
    %30 = arith.addf %26, %29 : vector<8x1xf32>
    %31 = math.rsqrt %30 : vector<8x1xf32>
    %32 = vector.broadcast %31 : vector<8x1xf32> to vector<8x32xf32>
    %33 = arith.mulf %28, %32 : vector<8x32xf32>
    %c0_16 = arith.constant 0 : index
    %c0_17 = arith.constant 0 : index
    %34 = vector.load %arg6[%c0_16, %c0_17] : memref<1x32xf32, #tpu.memory_space<vmem>>, vector<1x32xf32>
    %35 = vector.broadcast %34 : vector<1x32xf32> to vector<8x32xf32>
    %36 = arith.mulf %33, %35 : vector<8x32xf32>
    %c0_18 = arith.constant 0 : index
    %c0_19 = arith.constant 0 : index
    %37 = vector.load %arg7[%c0_18, %c0_19] : memref<1x32xf32, #tpu.memory_space<vmem>>, vector<1x32xf32>
    %38 = vector.broadcast %37 : vector<1x32xf32> to vector<8x32xf32>
    %39 = arith.addf %36, %38 : vector<8x32xf32>
    %c0_20 = arith.constant 0 : index
    %c0_21 = arith.constant 0 : index
    %40 = vector.load %arg8[%c0_20, %c0_21] : memref<8x32xf32, #tpu.memory_space<vmem>>, vector<8x32xf32>
    tpu.vector_store %arg8[%c0_20, %c0_21], %39 {strides = array<i32>} : memref<8x32xf32, #tpu.memory_space<vmem>>, vector<8x32xf32>,
    return
  }
  func.func @transform_0(%arg0: i32) -> (i32, i32) {
    %c0_i32 = arith.constant 0 : i32
    %c0_i32_0 = arith.constant 0 : i32
    return %arg0, %c0_i32 : i32, i32
  }
  func.func @transform_1(%arg0: i32) -> (i32, i32) {
    %c0_i32 = arith.constant 0 : i32
    %c0_i32_0 = arith.constant 0 : i32
    %c0_i32_1 = arith.constant 0 : i32
    return %c0_i32, %c0_i32_0 : i32, i32
  }
  func.func @transform_2(%arg0: i32) -> (i32, i32) {
    %c0_i32 = arith.constant 0 : i32
    %c0_i32_0 = arith.constant 0 : i32
    %c0_i32_1 = arith.constant 0 : i32
    return %c0_i32, %c0_i32_0 : i32, i32
  }
  func.func @transform_3(%arg0: i32) -> (i32, i32) {
    %c0_i32 = arith.constant 0 : i32
    %c0_i32_0 = arith.constant 0 : i32
    %c0_i32_1 = arith.constant 0 : i32
    return %c0_i32, %c0_i32_0 : i32, i32
  }
  func.func @transform_4(%arg0: i32) -> (i32, i32) {
    %c0_i32 = arith.constant 0 : i32
    %c0_i32_0 = arith.constant 0 : i32
    %c0_i32_1 = arith.constant 0 : i32
    return %c0_i32, %c0_i32_0 : i32, i32
  }
  func.func @transform_5(%arg0: i32) -> (i32, i32) {
    %c0_i32 = arith.constant 0 : i32
    %c0_i32_0 = arith.constant 0 : i32
    %c0_i32_1 = arith.constant 0 : i32
    return %c0_i32, %c0_i32_0 : i32, i32
  }
  func.func @transform_6(%arg0: i32) -> (i32, i32) {
    %c0_i32 = arith.constant 0 : i32
    %c0_i32_0 = arith.constant 0 : i32
    %c0_i32_1 = arith.constant 0 : i32
    return %c0_i32, %c0_i32_0 : i32, i32
  }
  func.func @transform_7(%arg0: i32) -> (i32, i32) {
    %c0_i32 = arith.constant 0 : i32
    %c0_i32_0 = arith.constant 0 : i32
    return %arg0, %c0_i32 : i32, i32
  }
}

</mosaic_0001>

<bundles_post_ra>
// kernel: ffn_layer.1
= control target key start
LH: loop header
LB: loop body
LE: loop exit
PB: predicated region body
PF: predicated region fallthrough
CT: control target
= control target key end

     0   :  { %12 = vsyncpa [#allocation3], 0  ;;  %s876_s0 = inlined_call_operand.vmem [shape: f32[16,32], index: 0, kind: input, shape index: {}]   ;;  %s877_s1 = inlined_call_operand.vmem [shape: bf16[32,64], index: 1, kind: input, shape index: {}]   ;;  %s878_s2 = inlined_call_operand.vmem [shape: f32[1,64], index: 2, kind: input, shape index: {}]   ;;  %s879_s3 = inlined_call_operand.vmem [shape: bf16[64,32], index: 3, kind: input, shape index: {}]   ;;  %s880_s4 = inlined_call_operand.vmem [shape: f32[1,32], index: 4, kind: input, shape index: {}]   ;;  %s881_s5 = inlined_call_operand.vmem [shape: f32[1,32], index: 5, kind: input, shape index: {}]   ;;  %s882_s6 = inlined_call_operand.vmem [shape: f32[1,32], index: 6, kind: input, shape index: {}]   ;;  %s883_s7 = inlined_call_operand.hbm [shape: f32[16,32], index: 7, kind: output, shape index: {}]  }
   0x1   :  { %14 = vsyncpa [#allocation3 + $0x1], 0  ;;  %s742_s24 = smov 0   ;;  %s744_s25 = smov 0  }
   0x2   :  { %s746_s26 = smov 0   ;;  %s748_s27 = smov 0  }
   0x3 LB: > { %s763_s28 = sadd.s32 4294967295, %s697_s27   ;;  %s536_s29 = sadd.s32 4294967294, %s697_s27   ;;  %s697_s27 = sphi %s748_s27, %s889_s27   ;;  %s693_s26 = sphi %s746_s26, %s888_s26   ;;  %s689_s25 = sphi %s744_s25, %s887_s25   ;;  %s685_s24 = sphi %s742_s24, %s886_s24  }
   0x4   : > { %s767_s30 = sadd.s32 1, %s697_s27   ;;  %s179_s8 = sadd.s32 1, %s693_s26 }
   0x5   : > { %s176_s9 = ssub.s32 %s697_s27, %s767_s30  ;;  %p189_p0 = scmp.ne.s32.totalorder %s693_s26, %s689_s25 }
   0x6   : > { %p177_p1 = scmp.eq.s32.totalorder %s176_s9, 0  ;;  %p190_p2 = scmp.eq.s32.totalorder %s763_s28, 1 }
   0x7   : > { %p195_p3 = scmp.ne.s32.totalorder %s689_s25, %s685_s24  ;;  %p196_p4 = scmp.eq.s32.totalorder %s536_s29, 1 }
   0x8   : > { %s778_s10 = scalar_select %p177_p1, %s693_s26, %s179_s8  }
   0x9   : > { %p780_p5 = por %p190_p2, %p189_p0  ;;  %p784_p6 = por %p196_p4, %p195_p3 }
   0xa   : > { %p539_p7 = scmp.ge.s32.totalorder %s697_s27, 1  ;;  %p239_p8 = scmp.lt.s32.totalorder %s697_s27, 3 }
   0xc   : > { %p240_p9 = pnand %p539_p7, %p239_p8 }
   0xd   : > { %v627_v0 = vld [vmem:[%s877_s1] sm:$0xff] (!%p240_p9)   ;;  %v699_v1 = vmov (!%p240_p9), 0.0   ;;  %v628_v2 = vld [vmem:[%s877_s1 + $0x8] sm:$0xff] (!%p240_p9)   ;;  %vm700_vm0 = vmmov (!%p240_p9), 0   ;;  %p270_p10 = scmp.lt.s32.totalorder (!%p240_p9), %s763_s28, 1  ;;  %vm300_vm1 = vcmask (!%p240_p9), 261120  }
   0xe   : > { %243 = sbr.rel (%p240_p9) target bundleno = 646 (0x286), region = 48  ;;  %566 = vmatprep.subr.bf16.mxu0 (!%p240_p9), %v699_v1  ;;  %574 = vmatprep.subr.bf16.mxu1 (!%p240_p9), %v699_v1  ;;  %v629_v3 = vld [vmem:[%s879_s3] sm:$0xff] (!%p240_p9)   ;;  %v630_v4 = vld [vmem:[%s879_s3 + $0x8] sm:$0xff] (!%p240_p9)   ;;  %v631_v7 = vld [vmem:[%s879_s3 + $0x10] sm:$0xff] (!%p240_p9)   ;;  %vm378_vm2 = vcmask (!%p240_p9), 523264   ;;  %s267_s20 = sand.u32 (!%p240_p9), 1, %s689_s25  }
   0xf   : > { %567 = vmatpush3.bf16.msra.mxu0 (!%p240_p9), %v627_v0  ;;  %570 = vmatprep.mubr.msk.bf16.mxu0 (!%p240_p9), %vm700_vm0, %v699_v1  ;;  %v632_v8 = vld [vmem:[%s879_s3 + $0x18] sm:$0xff] (!%p240_p9)   ;;  %v542_v9 = vld [vmem:[%s878_s2] ss:$0 sm:$0xff] (!%p240_p9)  ;;  %s540_s21 = sshll.u32 (!%p240_p9), %s267_s20, 3  ;;  %s555_s9 = sshll.u32 (!%p240_p9), %s763_s28, 7 }
  0x10   : > { %568 = vmatprep.subr.bf16.mxu0 (!%p240_p9), %v699_v1  ;;  %582 = vmatprep.mubr.msk.bf16.mxu1 (!%p240_p9), %vm700_vm0, %v699_v1  ;;  %v551_v18 = vld [vmem:[%s880_s4] ss:$0 sm:$0xff] (!%p240_p9)  ;;  %s269_s13 = scalar_lea.vmem (!%p240_p9), [#allocation2], %s540_s21  ;;  %s833_s17 = scalar_lea.hbm (!%p240_p9), %s883_s7, %s555_s9 }
  0x11   : > { %575 = vmatpush3.bf16.msra.mxu1 (!%p240_p9), %v629_v3  ;;  %v552_v36 = vld [vmem:[%s881_s5] ss:$0 sm:$0xff] (!%p240_p9)  ;;  %s477_s14 = sshll.u32 (!%p240_p9), %s269_s13, 4  ;;  %s464_s18 = scalar_lea.sflag (!%p240_p9), [#allocation3], %s267_s20  ;;  %s835_s14 = int_to_ptr.vmem [resolvable:$true] %s477_s14 }
  0x12   : > { %576 = vmatprep.subr.bf16.mxu1 (!%p240_p9), %v699_v1  ;;  %v553_v38 = vld [vmem:[%s882_s6] ss:$0 sm:$0xff] (!%p240_p9) }
  0x13   : > { %569 = vmatpush3.bf16.msra.mxu0 (!%p240_p9), %v628_v2 }
  0x15   : > { %s271_s19 = scalar_select %p270_p10, %s763_s28, 1  ;;  %577 = vmatpush3.bf16.msra.mxu1 %v630_v4 }
  0x16   : > { %578 = vmatprep.subr.bf16.mxu1 %v699_v1  ;;  %s701_s28 = smov [#allocation2]  }
  0x17   : > { %s541_s22 = sshll.u32 %s271_s19, 3  ;;  %s635_s19 = scalar_lea.vmem %s835_s14, 128 }
  0x18   : > { %s273_s8 = scalar_lea.vmem %s876_s0, %s541_s22  ;;  %p636_p11 = scmp.ne.s32.totalorder %s835_s14, %s635_s19 }
  0x19   : > { %v275_v5 = vld [vmem:[%s273_s8] sm:$0xff]  ;;  %579 = vmatpush3.bf16.msra.mxu1 %v631_v7  ;;  %s639_s21 = sshll.u32 %s701_s28, 4  ;;  %s640_s21 = int_to_ptr.vmem [resolvable:$false] %s639_s21 }
  0x1a   : > { %v276_v6 = vpack.c.bf16 %v275_v5, %v275_v5  ;;  %580 = vmatprep.subr.bf16.mxu1 %v699_v1  ;;  %p637_p12 = pnand %p636_p11, %p780_p5  ;;  %s641_s22 = scalar_lea.vmem %s640_s21, 256 }
  0x1b   : > { %p642_p0 = scmp.lt.s32.totalorder %s835_s14, %s640_s21  ;;  %p643_p1 = scmp.lt.s32.totalorder %s641_s22, %s635_s19 }
  0x1c   : > { %571 = vmatmul.mubr.msk.bf16.vlgmr.msra.gmra.mrb[0].mxu0 %vm300_vm1, %v276_v6  ;;  %p638_p13 = pneg %p637_p12 }
  0x1d   : > { %581 = vmatpush3.bf16.msra.mxu1 %v632_v8  ;;  %p644_p2 = por %p643_p1, %p642_p0 }
  0x1f   : > { %p645_p3 = pnand %p644_p2, %p638_p13 }
  0xef   : > { %v338_v10 = vpop.f32.mrb[0].mxu0 }
  0xf0   : > { %v339_v11 = vadd.f32 %v542_v9, %v338_v10  ;;  %v572_v12 = vpop.f32.mrb[1].mxu0 }
  0xf1   : > { %v341_v13 = vpop.f32.mrb[2].mxu0 }
  0xf2   : > { %v344_v14 = vmax.f32 %v339_v11, 0.0  ;;  %v573_v15 = vpop.f32.mrb[3].mxu0 }
  0xf4   : > { %v345_v16 = vpack.c.bf16 %v344_v14, %v344_v14 }
  0xf6   : > { %583 = vmatmul.mubr.msk.bf16.vlgmr.msra.gmra.mrb[0].mxu1 %vm378_vm2, %v345_v16 }
 0x1c9   : > { %v416_v17 = vpop.f32.mrb[0].mxu1 }
 0x1ca   : > { %v422_v19 = vadd.f32 %v416_v17, %v275_v5  ;;  %v584_v20 = vpop.f32.mrb[1].mxu1 }
 0x1cb   : > { %v419_v21 = vpop.f32.mrb[2].mxu1 }
 0x1cc   : > { %v430_v22 = vadd.f32 %v551_v18, %v422_v19  ;;  %v585_v23 = vpop.f32.mrb[3].mxu1 }
 0x1ce   : > { %v431_v24 = vsel %vm300_vm1, %v430_v22, 0.0  ;;  %v435_v25 = vmul.f32 %v430_v22, %v430_v22 }
 0x1cf   : > { %432 = vadd.xlane.f32.xlu0 %v431_v24 }
 0x1d0   : > { %v436_v26 = vsel %vm300_vm1, %v435_v25, 0.0 }
 0x1d3   : > { %437 = vadd.xlane.f32.xlu0 %v436_v26 }
 0x25c   : > { %v433_v27 = vpop.xlane.xlu0 %432 }
 0x25d   : > { %v434_v28 = vmul.f32 0.03125, %v433_v27 }
 0x25f   : > { %v440_v30 = vmul.f32 %v434_v28, %v434_v28  ;;  %v442_v34 = vsub.f32 %v430_v22, %v434_v28 }
 0x260   : > { %v438_v29 = vpop.xlane.xlu0 %437 }
 0x261   : > { %v439_v31 = vmul.f32 0.03125, %v438_v29 }
 0x263   : > { %v441_v32 = vsub.f32 %v439_v31, %v440_v30 }
 0x265   : > { %v443_v33 = vadd.f32 1e-05, %v441_v32 }
 0x267   : > { %633 = vrsqrt.f32 %v443_v33 }
 0x271   : > { %v634_v35 = vpop.eup %633 }
 0x272   : > { %v445_v37 = vmul.f32 %v634_v35, %v442_v34 }
 0x274   : > { %v453_v39 = vmul.f32 %v552_v36, %v445_v37 }
 0x276   : > { %v461_v40 = vadd.f32 %v553_v38, %v453_v39 }
 0x278   : > { %462 = vst.msk [vmem:[%s269_s13] sm:$0xff] %vm300_vm1, %v461_v40 }
 0x279   : > { %648 = shalt.err (!%p645_p3)
}
 0x27a   : > { %s649_s20 = scalar_lea.hbm %s833_s17, 128  ;;  %s653_s8 = scalar_lea.hbm %s883_s7, 256 }
 0x27b   : > { %p650_p4 = scmp.ne.s32.totalorder %s833_s17, %s649_s20  ;;  %p654_p9 = scmp.lt.u32.totalorder %s833_s17, %s883_s7 }
 0x27c   : > { %p655_p10 = scmp.lt.u32.totalorder %s653_s8, %s649_s20  ;;  %p657_p12 = scmp.lt.u32.totalorder %s649_s20, %s833_s17 }
 0x27d   : > { %p651_p7 = pnand %p650_p4, %p780_p5 }
 0x27e   : > { %p656_p11 = por %p655_p10, %p654_p9 }
 0x27f   : > { %p652_p8 = pneg %p651_p7 }
 0x280   : > { %p658_p13 = por %p657_p12, %p656_p11 }
 0x282   : > { %p659_p0 = pnand %p658_p13, %p652_p8 }
 0x284   : > { %662 = shalt.err (!%p659_p0)
}
 0x285   : > { %586 = dma.vmem_to_hbm [thread:$0]  (%p780_p5), %s835_s14, 128, %s833_s17, %s464_s18  }
 0x286 PF: > { %p592_p1 = scmp.ge.s32.totalorder %s697_s27, 2  ;;  %s489_s15 = sand.u32 1, %s685_s24  }
 0x287   : > { %s490_s16 = scalar_lea.sflag [#allocation3], %s489_s15 }
 0x288   : > { %p589_p2 = pnand %p592_p1, %p784_p6 }
 0x28a   : > { %680 = dma.done.wait (!%p589_p2), %s490_s16, 128  }
 0x28b   : > { %682 = vsyncadd (!%p589_p2), %s490_s16, 4294967168  ;;  %p17_p3 = scmp.ge.s32.totalorder %s767_s30, 4   ;;  %s886_s24 = smov %s689_s25 }
 0x28c   : > { %s887_s25 = smov %s693_s26  ;;  %s888_s26 = smov %s778_s10 }
 0x28d   : > { %s889_s27 = smov %s767_s30  ;;  %19 = sbr.rel (!%p17_p3) target bundleno = 3 (0x3), region = 83 }
 0x294   :  { %495 = vsyncpa [#allocation3], 1 }
 0x295   :  { %497 = vsyncpa [#allocation3 + $0x1], 1 }

</bundles_post_ra>
